<compile_context>
chip_gen: v7x
topology: tpu7x:2x2x1
jax: 0.10.0
libtpu: 0.0.40
codegen_flags: <defaults>
</compile_context>

<pallas_src>
import functools

import jax
import jax.numpy as jnp
from jax.experimental import pallas as pl
from jax.experimental.pallas import tpu as pltpu


def _round_up(x, m):
    return ((x + m - 1) // m) * m


def actor_critic_kernel(
    x_ref,           # [TB, state_dim]  f32 (cast to bf16 in-kernel)
    w1_ref, b1_ref,  # [state_dim, 256] bf16, [1, 256] f32
    w2_ref, b2_ref,  # [256, 256]       bf16, [1, 256] f32
    wh_ref, bh_ref,  # [256, HP]        bf16, [1, HP]  f32  (fused mean|value head, lane-padded)
    out_ref,         # [TB, HP]         f32
):
    # in-kernel cast: VPU work hides under the MXU matmuls
    x = x_ref[...].astype(jnp.bfloat16)

    # shared = Linear(state_dim, 256) -> ReLU -> Linear(256, 256) -> ReLU
    h1 = jnp.dot(x, w1_ref[...], preferred_element_type=jnp.float32) + b1_ref[...]
    h1 = jnp.maximum(h1, 0.0)
    h2 = jnp.dot(h1.astype(jnp.bfloat16), w2_ref[...],
                 preferred_element_type=jnp.float32) + b2_ref[...]
    h2 = jnp.maximum(h2, 0.0)

    # fused actor-mean + critic head, lane-dense (HP = multiple of 128) output
    out_ref[...] = (
        jnp.dot(h2.astype(jnp.bfloat16), wh_ref[...],
                preferred_element_type=jnp.float32) + bh_ref[...]
    )


def prepare_params(params):
    """One-time prep (not per-forward): build the fused, lane-padded head.

    Columns [0:A] of wh/bh = actor_mean, column [A] = critic.
    """
    H, A = params["wm"].shape
    HP = _round_up(A + 1, 128)                         # lane-dense head width
    wh = jnp.zeros((H, HP), jnp.bfloat16)
    wh = wh.at[:, :A].set(params["wm"]).at[:, A:A + 1].set(params["wc"])
    bh = jnp.zeros((1, HP), jnp.float32)
    bh = bh.at[:, :A].set(params["bm"]).at[:, A:A + 1].set(params["bc"])
    return dict(
        w1=params["w1"], b1=params["b1"],
        w2=params["w2"], b2=params["b2"],
        wh=wh, bh=bh, logstd=params["logstd"],
    )


def actor_critic_forward(state, prep, action_dim):
    """state: [B, state_dim] f32.  Returns (mean [B, A], std [A], value [B, 1])."""
    B, S = state.shape
    H = prep["w1"].shape[1]
    HP = prep["wh"].shape[1]
    A = action_dim

    # Batch tile: multiple of 16 (bf16 MXU-LHS sublane packing), capped at 512,
    # ~half the batch so big batches give >= 2 grid tiles (feeds both v7x TCs).
    TB = max(16, min(512, _round_up(pl.cdiv(B, 2), 16)))
    grid = (pl.cdiv(B, TB),)

    bytes_accessed = (
        B * S * 4                                                   # state (f32, read once)
        + (prep["w1"].size + prep["w2"].size + prep["wh"].size) * 2  # bf16 weights
        + (prep["b1"].size + prep["b2"].size + prep["bh"].size) * 4  # f32 biases
        + B * HP * 4                                                 # head writeback
    )

    head = pl.pallas_call(
        actor_critic_kernel,
        out_shape=jax.ShapeDtypeStruct((B, HP), jnp.float32),
        grid=grid,
        in_specs=[
            pl.BlockSpec((TB, S), lambda i: (i, 0)),    # state: tiled along batch
            pl.BlockSpec((S, H), lambda i: (0, 0)),     # weights/biases: VMEM-resident
            pl.BlockSpec((1, H), lambda i: (0, 0)),
            pl.BlockSpec((H, H), lambda i: (0, 0)),
            pl.BlockSpec((1, H), lambda i: (0, 0)),
            pl.BlockSpec((H, HP), lambda i: (0, 0)),
            pl.BlockSpec((1, HP), lambda i: (0, 0)),
        ],
        out_specs=pl.BlockSpec((TB, HP), lambda i: (i, 0)),
        compiler_params=pltpu.CompilerParams(
            dimension_semantics=("parallel",),           # shard batch tiles across TCs (v7x)
            vmem_limit_bytes=8 * 1024 * 1024,            # actual need ~1-4 MiB; leave headroom
        ),
        cost_estimate=pl.CostEstimate(
            flops=2 * B * (S * H + H * H + H * HP),
            transcendentals=0,
            bytes_accessed=bytes_accessed,
        ),
    )(state, prep["w1"], prep["b1"], prep["w2"], prep["b2"], prep["wh"], prep["bh"])

    # Slices stay inside the caller's jit so they fuse with downstream consumers.
    mean = head[:, :A]
    value = head[:, A:A + 1]
    std = jnp.exp(prep["logstd"][0])                     # state-independent
    return mean, std, value


def init_params(key, state_dim, action_dim, hidden=256):
    """Deterministic synthetic init (PyTorch-like uniform fan-in scaling).

    Weights stored bf16 (MXU operand dtype), biases / logstd f32.
    """
    ks = jax.random.split(key, 8)

    def linear(kw, kb, fan_in, fan_out):
        bound = 1.0 / jnp.sqrt(fan_in)
        w = jax.random.uniform(kw, (fan_in, fan_out), jnp.float32, -bound, bound)
        b = jax.random.uniform(kb, (1, fan_out), jnp.float32, -bound, bound)
        return w.astype(jnp.bfloat16), b

    w1, b1 = linear(ks[0], ks[1], state_dim, hidden)
    w2, b2 = linear(ks[2], ks[3], hidden, hidden)
    wm, bm = linear(ks[4], ks[5], hidden, action_dim)
    wc, bc = linear(ks[6], ks[7], hidden, 1)
    logstd = jnp.zeros((1, action_dim), jnp.float32)  # nn.Parameter(torch.zeros(action_dim))
    return dict(w1=w1, b1=b1, w2=w2, b2=b2, wm=wm, bm=bm, wc=wc, bc=bc, logstd=logstd)


def reference_forward(state, p):
    """Pure-JAX reference using the same bf16-operand / f32-accumulation recipe."""
    x = state.astype(jnp.bfloat16)
    h1 = jnp.maximum(jnp.dot(x, p["w1"], preferred_element_type=jnp.float32) + p["b1"], 0.0)
    h2 = jnp.maximum(
        jnp.dot(h1.astype(jnp.bfloat16), p["w2"], preferred_element_type=jnp.float32) + p["b2"],
        0.0,
    )
    mean = jnp.dot(h2.astype(jnp.bfloat16), p["wm"], preferred_element_type=jnp.float32) + p["bm"]
    value = jnp.dot(h2.astype(jnp.bfloat16), p["wc"], preferred_element_type=jnp.float32) + p["bc"]
    std = jnp.exp(p["logstd"][0])
    return mean, std, value


if __name__ == "__main__":
    B, STATE_DIM, ACTION_DIM = 2, 32, 8

    key = jax.random.PRNGKey(0)
    k_state, k_params = jax.random.split(key)

    state = jax.random.normal(k_state, (B, STATE_DIM), jnp.float32)
    params = init_params(k_params, STATE_DIM, ACTION_DIM)

    # Fused head built ONCE (params are static across steps), not per forward.
    prep = prepare_params(params)

    fwd = jax.jit(functools.partial(actor_critic_forward,
                                    prep=prep, action_dim=ACTION_DIM))
    mean, std, value = fwd(state)
    jax.block_until_ready((mean, std, value))

    # correctness check against a pure-JAX reference (same bf16/f32-accum recipe)
    ref_mean, ref_std, ref_value = reference_forward(state, params)
    assert mean.shape == (B, ACTION_DIM) and std.shape == (ACTION_DIM,) and value.shape == (B, 1)
    assert jnp.allclose(mean, ref_mean, atol=2e-3, rtol=2e-3)
    assert jnp.allclose(std, ref_std, atol=1e-6, rtol=1e-6)
    assert jnp.allclose(value, ref_value, atol=2e-3, rtol=2e-3)

    print("KERNEL_OK")
</pallas_src>

<mosaic_0001>
module attributes {stable_mosaic.version = 11 : i64} {
  func.func @actor_critic_kernel(%arg0: i32, %arg1: memref<16x32xf32, #tpu.memory_space<vmem>>, %arg2: memref<32x256xbf16, #tpu.memory_space<vmem>>, %arg3: memref<1x256xf32, #tpu.memory_space<vmem>>, %arg4: memref<256x256xbf16, #tpu.memory_space<vmem>>, %arg5: memref<1x256xf32, #tpu.memory_space<vmem>>, %arg6: memref<256x128xbf16, #tpu.memory_space<vmem>>, %arg7: memref<1x128xf32, #tpu.memory_space<vmem>>, %arg8: memref<16x128xf32, #tpu.memory_space<vmem>>) attributes {dimension_semantics = [#tpu.dimension_semantics<parallel>], iteration_bounds = array<i64: 1>, scalar_prefetch = 0 : i64, scratch_operands = 0 : i64, tpu.core_type = #tpu.core_type<tc>, window_params = [{transform_indices = @transform_0, window_bounds = array<i64: 16, 32>}, {pipeline_mode = #tpu.pipeline_mode<synchronous>, transform_indices = @transform_1, window_bounds = array<i64: 32, 256>}, {pipeline_mode = #tpu.pipeline_mode<synchronous>, transform_indices = @transform_2, window_bounds = array<i64: 1, 256>}, {pipeline_mode = #tpu.pipeline_mode<synchronous>, transform_indices = @transform_3, window_bounds = array<i64: 256, 256>}, {pipeline_mode = #tpu.pipeline_mode<synchronous>, transform_indices = @transform_4, window_bounds = array<i64: 1, 256>}, {pipeline_mode = #tpu.pipeline_mode<synchronous>, transform_indices = @transform_5, window_bounds = array<i64: 256, 128>}, {pipeline_mode = #tpu.pipeline_mode<synchronous>, transform_indices = @transform_6, window_bounds = array<i64: 1, 128>}, {transform_indices = @transform_7, window_bounds = array<i64: 16, 128>}]} {
    %c0 = arith.constant 0 : index
    %c0_0 = arith.constant 0 : index
    %0 = vector.load %arg1[%c0, %c0_0] : memref<16x32xf32, #tpu.memory_space<vmem>>, vector<16x32xf32>
    %1 = arith.truncf %0 : vector<16x32xf32> to vector<16x32xbf16>
    %c0_1 = arith.constant 0 : index
    %c0_2 = arith.constant 0 : index
    %2 = vector.load %arg2[%c0_1, %c0_2] : memref<32x256xbf16, #tpu.memory_space<vmem>>, vector<32x256xbf16>
    %cst = arith.constant dense<0.000000e+00> : vector<16x256xf32>
    %3 = tpu.matmul %1, %2, %cst {dimension_numbers = #tpu.dot_dimension_numbers<[1], [0], [0], [1], [0, 0, 1, 1], [], []>} : vector<16x32xbf16>, vector<32x256xbf16>, vector<16x256xf32> -> vector<16x256xf32>
    %c0_3 = arith.constant 0 : index
    %c0_4 = arith.constant 0 : index
    %4 = vector.load %arg3[%c0_3, %c0_4] : memref<1x256xf32, #tpu.memory_space<vmem>>, vector<1x256xf32>
    %5 = vector.broadcast %4 : vector<1x256xf32> to vector<16x256xf32>
    %6 = arith.addf %3, %5 : vector<16x256xf32>
    %cst_5 = arith.constant 0.000000e+00 : f32
    %7 = vector.broadcast %cst_5 : f32 to vector<16x256xf32>
    %8 = arith.maximumf %6, %7 : vector<16x256xf32>
    %9 = arith.truncf %8 : vector<16x256xf32> to vector<16x256xbf16>
    %c0_6 = arith.constant 0 : index
    %c0_7 = arith.constant 0 : index
    %10 = vector.load %arg4[%c0_6, %c0_7] : memref<256x256xbf16, #tpu.memory_space<vmem>>, vector<256x256xbf16>
    %cst_8 = arith.constant dense<0.000000e+00> : vector<16x256xf32>
    %11 = tpu.matmul %9, %10, %cst_8 {dimension_numbers = #tpu.dot_dimension_numbers<[1], [0], [0], [1], [0, 0, 1, 1], [], []>} : vector<16x256xbf16>, vector<256x256xbf16>, vector<16x256xf32> -> vector<16x256xf32>
    %c0_9 = arith.constant 0 : index
    %c0_10 = arith.constant 0 : index
    %12 = vector.load %arg5[%c0_9, %c0_10] : memref<1x256xf32, #tpu.memory_space<vmem>>, vector<1x256xf32>
    %13 = vector.broadcast %12 : vector<1x256xf32> to vector<16x256xf32>
    %14 = arith.addf %11, %13 : vector<16x256xf32>
    %cst_11 = arith.constant 0.000000e+00 : f32
    %15 = vector.broadcast %cst_11 : f32 to vector<16x256xf32>
    %16 = arith.maximumf %14, %15 : vector<16x256xf32>
    %17 = arith.truncf %16 : vector<16x256xf32> to vector<16x256xbf16>
    %c0_12 = arith.constant 0 : index
    %c0_13 = arith.constant 0 : index
    %18 = vector.load %arg6[%c0_12, %c0_13] : memref<256x128xbf16, #tpu.memory_space<vmem>>, vector<256x128xbf16>
    %cst_14 = arith.constant dense<0.000000e+00> : vector<16x128xf32>
    %19 = tpu.matmul %17, %18, %cst_14 {dimension_numbers = #tpu.dot_dimension_numbers<[1], [0], [0], [1], [0, 0, 1, 1], [], []>} : vector<16x256xbf16>, vector<256x128xbf16>, vector<16x128xf32> -> vector<16x128xf32>
    %c0_15 = arith.constant 0 : index
    %c0_16 = arith.constant 0 : index
    %20 = vector.load %arg7[%c0_15, %c0_16] : memref<1x128xf32, #tpu.memory_space<vmem>>, vector<1x128xf32>
    %21 = vector.broadcast %20 : vector<1x128xf32> to vector<16x128xf32>
    %22 = arith.addf %19, %21 : vector<16x128xf32>
    %c0_17 = arith.constant 0 : index
    %c0_18 = arith.constant 0 : index
    %23 = vector.load %arg8[%c0_17, %c0_18] : memref<16x128xf32, #tpu.memory_space<vmem>>, vector<16x128xf32>
    tpu.vector_store %arg8[%c0_17, %c0_18], %22 {strides = array<i32>} : memref<16x128xf32, #tpu.memory_space<vmem>>, vector<16x128xf32>,
    return
  }
  func.func @transform_0(%arg0: i32) -> (i32, i32) {
    %c0_i32 = arith.constant 0 : i32
    %c0_i32_0 = arith.constant 0 : i32
    return %arg0, %c0_i32 : i32, i32
  }
  func.func @transform_1(%arg0: i32) -> (i32, i32) {
    %c0_i32 = arith.constant 0 : i32
    %c0_i32_0 = arith.constant 0 : i32
    %c0_i32_1 = arith.constant 0 : i32
    return %c0_i32, %c0_i32_0 : i32, i32
  }
  func.func @transform_2(%arg0: i32) -> (i32, i32) {
    %c0_i32 = arith.constant 0 : i32
    %c0_i32_0 = arith.constant 0 : i32
    %c0_i32_1 = arith.constant 0 : i32
    return %c0_i32, %c0_i32_0 : i32, i32
  }
  func.func @transform_3(%arg0: i32) -> (i32, i32) {
    %c0_i32 = arith.constant 0 : i32
    %c0_i32_0 = arith.constant 0 : i32
    %c0_i32_1 = arith.constant 0 : i32
    return %c0_i32, %c0_i32_0 : i32, i32
  }
  func.func @transform_4(%arg0: i32) -> (i32, i32) {
    %c0_i32 = arith.constant 0 : i32
    %c0_i32_0 = arith.constant 0 : i32
    %c0_i32_1 = arith.constant 0 : i32
    return %c0_i32, %c0_i32_0 : i32, i32
  }
  func.func @transform_5(%arg0: i32) -> (i32, i32) {
    %c0_i32 = arith.constant 0 : i32
    %c0_i32_0 = arith.constant 0 : i32
    %c0_i32_1 = arith.constant 0 : i32
    return %c0_i32, %c0_i32_0 : i32, i32
  }
  func.func @transform_6(%arg0: i32) -> (i32, i32) {
    %c0_i32 = arith.constant 0 : i32
    %c0_i32_0 = arith.constant 0 : i32
    %c0_i32_1 = arith.constant 0 : i32
    return %c0_i32, %c0_i32_0 : i32, i32
  }
  func.func @transform_7(%arg0: i32) -> (i32, i32) {
    %c0_i32 = arith.constant 0 : i32
    %c0_i32_0 = arith.constant 0 : i32
    return %arg0, %c0_i32 : i32, i32
  }
}

</mosaic_0001>

<bundles_post_ra>
// kernel: actor_critic_forward.1
= control target key start
LH: loop header
LB: loop body
LE: loop exit
PB: predicated region body
PF: predicated region fallthrough
CT: control target
= control target key end

     0   :  { %v736_v2 = vmov 0   ;;  %vm66_vm0 = vcmask 261120   ;;  %v36_v51 = vlaneseq  ;;  %s951_s0 = inlined_call_operand.vmem [shape: f32[2,32], index: 0, kind: input, shape index: {}]   ;;  %s952_s1 = inlined_call_operand.vmem [shape: bf16[32,256], index: 1, kind: input, shape index: {}]   ;;  %s953_s2 = inlined_call_operand.vmem [shape: f32[1,256], index: 2, kind: input, shape index: {}]   ;;  %s954_s3 = inlined_call_operand.vmem [shape: bf16[256,256], index: 3, kind: input, shape index: {}]   ;;  %s955_s4 = inlined_call_operand.vmem [shape: f32[1,256], index: 4, kind: input, shape index: {}]   ;;  %s956_s5 = inlined_call_operand.vmem [shape: bf16[256,128], index: 5, kind: input, shape index: {}]   ;;  %s957_s6 = inlined_call_operand.vmem [shape: f32[1,128], index: 6, kind: input, shape index: {}]   ;;  %s958_s7 = inlined_call_operand.vmem [shape: f32[2,128], index: 7, kind: output, shape index: {}]  }
   0x1   :  { %v666_v0 = vld [vmem:[%s952_s1 + $0x4] ss:$8 sps:$4 sm:$0xff]   ;;  %v668_v1 = vld [vmem:[%s952_s1] ss:$8 sps:$4 sm:$0xff]   ;;  %102 = vmatprep.mubr.bf16.mxu0 %v736_v2  ;;  %v669_v3 = vld [vmem:[%s952_s1 + $0x14] ss:$8 sps:$4 sm:$0xff]  }
   0x2   :  { %70 = vmatprep.subr.bf16.mxu0 %v666_v0  ;;  %v671_v4 = vld [vmem:[%s952_s1 + $0x10] ss:$8 sps:$4 sm:$0xff]   ;;  %v27_v5 = vld [vmem:[%s951_s0] sm:$0xff]  ;;  %v28_v6 = vld [vmem:[%s951_s0 + $0x8] sm:$0xff]  ;;  %v37_v52 = vshrl.u32 %v36_v51, 7 }
   0x3   :  { %71 = vmatpush1.bf16.msra.mxu0 %v668_v1  ;;  %v672_v7 = vld [vmem:[%s954_s3 + $0x4] ss:$8 sps:$4 sm:$0xff]   ;;  %v674_v8 = vld [vmem:[%s954_s3] ss:$8 sps:$4 sm:$0xff]   ;;  %v675_v9 = vld [vmem:[%s954_s3 + $0x14] ss:$8 sps:$4 sm:$0xff]   ;;  %v29_v10 = vpack.c.bf16 %v28_v6, %v27_v5 }
   0x4   :  { %72 = vmatprep.subr.bf16.mxu0 %v669_v3  ;;  %323 = vmatprep.subr.bf16.mxu1 %v672_v7  ;;  %v677_v11 = vld [vmem:[%s954_s3 + $0x10] ss:$8 sps:$4 sm:$0xff]   ;;  %v678_v12 = vld [vmem:[%s954_s3 + $0x24] ss:$8 sps:$4 sm:$0xff]   ;;  %v680_v13 = vld [vmem:[%s954_s3 + $0x20] ss:$8 sps:$4 sm:$0xff]  }
   0x5   :  { %324 = vmatpush1.bf16.msra.mxu1 %v674_v8  ;;  %v681_v14 = vld [vmem:[%s954_s3 + $0x34] ss:$8 sps:$4 sm:$0xff]   ;;  %v683_v15 = vld [vmem:[%s954_s3 + $0x30] ss:$8 sps:$4 sm:$0xff]   ;;  %v684_v16 = vld [vmem:[%s954_s3 + $0x44] ss:$8 sps:$4 sm:$0xff]  }
   0x6   :  { %325 = vmatprep.subr.bf16.mxu1 %v675_v9  ;;  %v686_v17 = vld [vmem:[%s954_s3 + $0x40] ss:$8 sps:$4 sm:$0xff]   ;;  %v687_v18 = vld [vmem:[%s954_s3 + $0x54] ss:$8 sps:$4 sm:$0xff]   ;;  %v689_v19 = vld [vmem:[%s954_s3 + $0x50] ss:$8 sps:$4 sm:$0xff]  }
   0x7   :  { %73 = vmatpush1.bf16.msra.mxu0 %v671_v4  ;;  %v690_v20 = vld [vmem:[%s954_s3 + $0x64] ss:$8 sps:$4 sm:$0xff]   ;;  %v692_v21 = vld [vmem:[%s954_s3 + $0x60] ss:$8 sps:$4 sm:$0xff]   ;;  %v693_v22 = vld [vmem:[%s954_s3 + $0x74] ss:$8 sps:$4 sm:$0xff]  }
   0x8   :  { %v695_v23 = vld [vmem:[%s954_s3 + $0x70] ss:$8 sps:$4 sm:$0xff]   ;;  %v696_v24 = vld [vmem:[%s954_s3 + $0x84] ss:$8 sps:$4 sm:$0xff]   ;;  %v698_v25 = vld [vmem:[%s954_s3 + $0x80] ss:$8 sps:$4 sm:$0xff]  }
   0x9   :  { %326 = vmatpush1.bf16.msra.mxu1 %v677_v11  ;;  %v699_v26 = vld [vmem:[%s954_s3 + $0x94] ss:$8 sps:$4 sm:$0xff]   ;;  %v701_v27 = vld [vmem:[%s954_s3 + $0x90] ss:$8 sps:$4 sm:$0xff]   ;;  %v702_v28 = vld [vmem:[%s954_s3 + $0xa4] ss:$8 sps:$4 sm:$0xff]  }
   0xa   :  { %593 = vmatmul.mubr.msk.bf16.vlgmr.msra.gmra.mrb[0].mxu0 %vm66_vm0, %v29_v10  ;;  %327 = vmatprep.subr.bf16.mxu1 %v678_v12  ;;  %v704_v29 = vld [vmem:[%s954_s3 + $0xa0] ss:$8 sps:$4 sm:$0xff]   ;;  %v705_v30 = vld [vmem:[%s954_s3 + $0xb4] ss:$8 sps:$4 sm:$0xff]   ;;  %v707_v31 = vld [vmem:[%s954_s3 + $0xb0] ss:$8 sps:$4 sm:$0xff]  }
   0xb   :  { %v708_v32 = vld [vmem:[%s954_s3 + $0xc4] ss:$8 sps:$4 sm:$0xff]   ;;  %v710_v33 = vld [vmem:[%s954_s3 + $0xc0] ss:$8 sps:$4 sm:$0xff]   ;;  %v711_v34 = vld [vmem:[%s954_s3 + $0xd4] ss:$8 sps:$4 sm:$0xff]  }
   0xc   :  { %v713_v35 = vld [vmem:[%s954_s3 + $0xd0] ss:$8 sps:$4 sm:$0xff]   ;;  %v714_v36 = vld [vmem:[%s954_s3 + $0xe4] ss:$8 sps:$4 sm:$0xff]   ;;  %v716_v37 = vld [vmem:[%s954_s3 + $0xe0] ss:$8 sps:$4 sm:$0xff]  }
   0xd   :  { %328 = vmatpush1.bf16.msra.mxu1 %v680_v13  ;;  %v717_v38 = vld [vmem:[%s954_s3 + $0xf4] ss:$8 sps:$4 sm:$0xff]   ;;  %v719_v39 = vld [vmem:[%s954_s3 + $0xf0] ss:$8 sps:$4 sm:$0xff]   ;;  %v720_v40 = vld [vmem:[%s956_s5 + $0x40] sm:$0xff]   ;;  %v38_v53 = vsub.s32 0, %v37_v52 }
   0xe   :  { %329 = vmatprep.subr.bf16.mxu1 %v681_v14  ;;  %v721_v41 = vld [vmem:[%s956_s5] sm:$0xff]   ;;  %v722_v42 = vld [vmem:[%s956_s5 + $0x48] sm:$0xff]   ;;  %643 = vmatprep.subr.bf16.mxu0 %v720_v40  ;;  %v724_v44 = vld [vmem:[%s956_s5 + $0x50] sm:$0xff]   ;;  %v42_v55 = vsub.s32 1, %v37_v52 }
   0xf   :  { %644 = vmatpush3.bf16.msra.mxu0 %v721_v41  ;;  %v723_v43 = vld [vmem:[%s956_s5 + $0x8] sm:$0xff]   ;;  %v725_v45 = vld [vmem:[%s956_s5 + $0x10] sm:$0xff]   ;;  %v726_v46 = vld [vmem:[%s956_s5 + $0x58] sm:$0xff]  }
  0x10   :  { %645 = vmatprep.subr.bf16.mxu0 %v722_v42  ;;  %v727_v47 = vld [vmem:[%s956_s5 + $0x18] sm:$0xff]   ;;  %v728_v48 = vld [vmem:[%s956_s5 + $0x60] sm:$0xff]   ;;  %v730_v50 = vld [vmem:[%s956_s5 + $0x68] sm:$0xff]  }
  0x11   :  { %330 = vmatpush1.bf16.msra.mxu1 %v683_v15  ;;  %v729_v49 = vld [vmem:[%s956_s5 + $0x20] sm:$0xff]   ;;  %v731_v8 = vld [vmem:[%s956_s5 + $0x28] sm:$0xff]   ;;  %v732_v9 = vld [vmem:[%s956_s5 + $0x70] sm:$0xff]  }
  0x12   :  { %331 = vmatprep.subr.bf16.mxu1 %v684_v16  ;;  %v34_v54 = vld [vmem:[%s953_s2] sm:$0x3]  ;;  %v733_v10 = vld [vmem:[%s956_s5 + $0x30] sm:$0xff]   ;;  %v734_v11 = vld [vmem:[%s956_s5 + $0x78] sm:$0xff]  }
  0x13   :  { %646 = vmatpush3.bf16.msra.mxu0 %v723_v43  ;;  %v39_v56 = vrot.slane %v34_v54, %v38_v53  ;;  %v43_v57 = vrot.slane %v34_v54, %v42_v55  ;;  %v735_v12 = vld [vmem:[%s956_s5 + $0x38] sm:$0xff]   ;;  %v151_v13 = vld [vmem:[%s955_s4] sm:$0x3] }
  0x14   :  { %647 = vmatprep.subr.bf16.mxu0 %v724_v44  ;;  %v156_v14 = vrot.slane %v151_v13, %v38_v53  ;;  %v160_v15 = vrot.slane %v151_v13, %v42_v55 }
  0x15   :  { %332 = vmatpush1.bf16.msra.mxu1 %v686_v17 }
  0x16   :  { %333 = vmatprep.subr.bf16.mxu1 %v687_v18 }
  0x17   :  { %648 = vmatpush3.bf16.msra.mxu0 %v725_v45 }
  0x18   :  { %649 = vmatprep.subr.bf16.mxu0 %v726_v46 }
  0x19   :  { %334 = vmatpush1.bf16.msra.mxu1 %v689_v19 }
  0x1a   :  { %335 = vmatprep.subr.bf16.mxu1 %v690_v20 }
  0x1b   :  { %650 = vmatpush3.bf16.msra.mxu0 %v727_v47 }
  0x1c   :  { %651 = vmatprep.subr.bf16.mxu0 %v728_v48 }
  0x1d   :  { %336 = vmatpush1.bf16.msra.mxu1 %v692_v21 }
  0x1e   :  { %337 = vmatprep.subr.bf16.mxu1 %v693_v22 }
  0x1f   :  { %652 = vmatpush3.bf16.msra.mxu0 %v729_v49 }
  0x20   :  { %653 = vmatprep.subr.bf16.mxu0 %v730_v50 }
  0x21   :  { %338 = vmatpush1.bf16.msra.mxu1 %v695_v23 }
  0x22   :  { %339 = vmatprep.subr.bf16.mxu1 %v696_v24 }
  0x23   :  { %654 = vmatpush3.bf16.msra.mxu0 %v731_v8 }
  0x24   :  { %655 = vmatprep.subr.bf16.mxu0 %v732_v9 }
  0x25   :  { %340 = vmatpush1.bf16.msra.mxu1 %v698_v25 }
  0x26   :  { %341 = vmatprep.subr.bf16.mxu1 %v699_v26 }
  0x27   :  { %656 = vmatpush3.bf16.msra.mxu0 %v733_v10 }
  0x28   :  { %657 = vmatprep.subr.bf16.mxu0 %v734_v11 }
  0x29   :  { %342 = vmatpush1.bf16.msra.mxu1 %v701_v27 }
  0x2a   :  { %343 = vmatprep.subr.bf16.mxu1 %v702_v28 }
  0x2b   :  { %658 = vmatpush3.bf16.msra.mxu0 %v735_v12 }
  0x2d   :  { %344 = vmatpush1.bf16.msra.mxu1 %v704_v29 }
  0x2e   :  { %345 = vmatprep.subr.bf16.mxu1 %v705_v30 }
  0x31   :  { %346 = vmatpush1.bf16.msra.mxu1 %v707_v31  ;;  %v626_v31 = vld [vmem:[%s957_s6] ss:$0 sm:$0xff] }
  0x32   :  { %347 = vmatprep.subr.bf16.mxu1 %v708_v32 }
  0x35   :  { %348 = vmatpush1.bf16.msra.mxu1 %v710_v33 }
  0x36   :  { %349 = vmatprep.subr.bf16.mxu1 %v711_v34 }
  0x39   :  { %350 = vmatpush1.bf16.msra.mxu1 %v713_v35 }
  0x3a   :  { %351 = vmatprep.subr.bf16.mxu1 %v714_v36 }
  0x3d   :  { %352 = vmatpush1.bf16.msra.mxu1 %v716_v37 }
  0x3e   :  { %353 = vmatprep.subr.bf16.mxu1 %v717_v38 }
  0x41   :  { %354 = vmatpush1.bf16.msra.mxu1 %v719_v39 }
  0xdd   :  { %v104_v58 = vpop.f32.mrb[0].mxu0 }
  0xde   :  { %v105_v59 = vadd.f32 %v104_v58, %v39_v56  ;;  %v106_v60 = vpop.f32.mrb[1].mxu0 }
  0xdf   :  { %v107_v61 = vadd.f32 %v106_v60, %v43_v57  ;;  %v108_v62 = vpop.f32.mrb[2].mxu0 }
  0xe0   :  { %v109_v63 = vadd.f32 %v108_v62, %v39_v56  ;;  %v110_v0 = vpop.f32.mrb[3].mxu0  ;;  %v113_v2 = vmax.f32 %v105_v59, 0.0 }
  0xe1   :  { %v111_v1 = vadd.f32 %v110_v0, %v43_v57  ;;  %v114_v4 = vmax.f32 %v107_v61, 0.0 }
  0xe2   :  { %v115_v3 = vmax.f32 %v109_v63, 0.0 }
  0xe3   :  { %v116_v5 = vmax.f32 %v111_v1, 0.0 }
  0xe4   :  { %v117_v6 = vpack.c.bf16 %v115_v3, %v113_v2 }
  0xe5   :  { %v118_v7 = vpack.c.bf16 %v116_v5, %v114_v4 }
  0xe7   :  { %355 = vmatprep.mubr.bf16.mxu1 %v118_v7 }
  0xe8   :  { %356 = vmatmul.mubr.bf16.vlgmr.msra.gmra.mrb[0].mxu1 %v117_v6 }
 0x1bb   :  { %v357_v16 = vpop.f32.mrb[0].mxu1 }
 0x1bc   :  { %v358_v17 = vadd.f32 %v357_v16, %v156_v14  ;;  %v359_v18 = vpop.f32.mrb[1].mxu1 }
 0x1bd   :  { %v360_v19 = vadd.f32 %v359_v18, %v160_v15  ;;  %v361_v20 = vpop.f32.mrb[2].mxu1 }
 0x1be   :  { %v362_v21 = vadd.f32 %v361_v20, %v156_v14  ;;  %v363_v22 = vpop.f32.mrb[3].mxu1  ;;  %v366_v24 = vmax.f32 %v358_v17, 0.0 }
 0x1bf   :  { %v364_v23 = vadd.f32 %v363_v22, %v160_v15  ;;  %v367_v26 = vmax.f32 %v360_v19, 0.0 }
 0x1c0   :  { %v368_v25 = vmax.f32 %v362_v21, 0.0 }
 0x1c1   :  { %v369_v27 = vmax.f32 %v364_v23, 0.0 }
 0x1c2   :  { %v370_v28 = vpack.c.bf16 %v368_v25, %v366_v24 }
 0x1c3   :  { %v371_v29 = vpack.c.bf16 %v369_v27, %v367_v26 }
 0x1c5   :  { %539 = vmatprep.mubr.bf16.mxu0 %v371_v29 }
 0x1c6   :  { %540 = vmatmul.mubr.bf16.vlgmr.msra.gmra.mrb[4].mxu0 %v370_v28 }
 0x299   :  { %v659_v30 = vpop.f32.mrb[4].mxu0 }
 0x29a   :  { %v660_v32 = vpop.f32.mrb[5].mxu0 }
 0x29b   :  { %v661_v33 = vadd.f32 %v660_v32, %v659_v30  ;;  %v662_v34 = vpop.f32.mrb[6].mxu0 }
 0x29c   :  { %v663_v35 = vpop.f32.mrb[7].mxu0 }
 0x29d   :  { %v542_v36 = vadd.f32 %v661_v33, %v626_v31 }
 0x29f   :  { %548 = vst [vmem:[#allocation2] sm:$0xff] %v542_v36 }
 0x2a6   :  { %v567_v37 = vld [vmem:[#allocation2] sm:$0x3] }
 0x2a7   :  { %568 = vst [vmem:[%s958_s7] sm:$0x3] %v567_v37 }

</bundles_post_ra>
